<compile_context>
chip_gen: v7x
topology: tpu7x:2x2x1
jax: 0.10.0
libtpu: 0.0.40
codegen_flags: <defaults>
</compile_context>

<pallas_src>
import functools

import jax
import jax.numpy as jnp
from jax.experimental import pallas as pl
from jax.experimental.pallas import tpu as pltpu


def _round_up(x, m):
    return ((x + m - 1) // m) * m


def _scorenet_kernel(x_ref, sig_ref, w1_ref, b1_ref, w2_ref, b2_ref,
                     w3_ref, b3_ref, o_ref, *, input_dim):
    # ---- layer 1: [tm, D+1] @ [D+1, 256] with K tiny -> VPU broadcast-FMAs ----
    # (folds the torch.cat([x, sigma]) into the kernel: row `input_dim` of w1
    #  multiplies sigma, rows 0..input_dim-1 multiply the columns of x)
    sig = sig_ref[...]                                              # [tm, 1] f32
    acc = sig * w1_ref[pl.ds(input_dim, 1), :] + b1_ref[...]        # [tm, 256]
    x = x_ref[...]                                                  # [tm, D] f32
    for d in range(input_dim):                                      # static, D is tiny
        acc = acc + x[:, d:d + 1] * w1_ref[pl.ds(d, 1), :]
    h1 = jnp.maximum(acc, 0.0)                                      # f32

    # ---- layer 2: MXU matmul (bf16 or f32 inputs, f32 accumulate) ----
    h2 = jnp.dot(h1.astype(w2_ref.dtype), w2_ref[...],
                 preferred_element_type=jnp.float32) + b2_ref[...]
    h2 = jnp.maximum(h2, 0.0)                                       # f32

    # ---- layer 3: MXU matmul into a lane-dense (N padded to 128) output ----
    out = jnp.dot(h2.astype(w3_ref.dtype), w3_ref[...],
                  preferred_element_type=jnp.float32) + b3_ref[...]
    o_ref[...] = out.astype(o_ref.dtype)


def scorenet_forward(x, sigma, params, *, tm=256, use_bf16=True):
    """x: [B, input_dim] f32, sigma: [B, 1] f32 -> [B, input_dim] f32."""
    w1, b1, w2, b2, w3, b3 = params          # [in, out] layout
    B, D = x.shape
    H = w1.shape[1]
    out_dim = w3.shape[1]

    # Lane-dense output: pad fc3's N up to a multiple of 128 (zeros).
    n_pad = max(128, _round_up(out_dim, 128))
    w3p = jnp.zeros((H, n_pad), w3.dtype).at[:, :out_dim].set(w3)
    b3p = jnp.zeros((1, n_pad), b3.dtype).at[:, :out_dim].set(b3)

    # bf16 inputs to the big matmuls: halves MXU passes and weight DMA bytes.
    mxu_dtype = jnp.bfloat16 if use_bf16 else jnp.float32
    w2c = w2.astype(mxu_dtype)
    w3c = w3p.astype(mxu_dtype)

    # Tile the batch; pad rows to a multiple of the tile (tm multiple of 8).
    tm = min(tm, _round_up(B, 8))
    b_pad = _round_up(B, tm)
    if b_pad != B:
        x = jnp.pad(x, ((0, b_pad - B), (0, 0)))
        sigma = jnp.pad(sigma, ((0, b_pad - B), (0, 0)))
    grid = (b_pad // tm,)

    flops = 2 * b_pad * ((D + 1) * H + H * H + H * n_pad)
    bytes_accessed = (
        x.size * 4 + sigma.size * 4
        + w1.size * 4 + b1.size * 4
        + w2c.size * w2c.dtype.itemsize + b2.size * 4
        + w3c.size * w3c.dtype.itemsize + b3p.size * 4
        + b_pad * n_pad * 4
    )

    # TODO(synk): in an annealed-Langevin sampling loop, amortize weight DMA
    # across steps (step-loop grid axis or cross-call VMEM/semaphore futures)
    # instead of re-fetching ~0.25 MB of weights per score evaluation.
    kernel = functools.partial(_scorenet_kernel, input_dim=D)
    out = pl.pallas_call(
        kernel,
        out_shape=jax.ShapeDtypeStruct((b_pad, n_pad), jnp.float32),
        grid=grid,
        in_specs=[
            pl.BlockSpec((tm, D), lambda i: (i, 0)),       # x        (tiled over M)
            pl.BlockSpec((tm, 1), lambda i: (i, 0)),       # sigma    (tiled over M)
            pl.BlockSpec((D + 1, H), lambda i: (0, 0)),    # w1       (VMEM-resident)
            pl.BlockSpec((1, H), lambda i: (0, 0)),        # b1
            pl.BlockSpec((H, H), lambda i: (0, 0)),        # w2       (VMEM-resident)
            pl.BlockSpec((1, H), lambda i: (0, 0)),        # b2
            pl.BlockSpec((H, n_pad), lambda i: (0, 0)),    # w3 (padded, resident)
            pl.BlockSpec((1, n_pad), lambda i: (0, 0)),    # b3 (padded)
        ],
        out_specs=pl.BlockSpec((tm, n_pad), lambda i: (i, 0)),
        compiler_params=pltpu.CompilerParams(
            dimension_semantics=("parallel",)),
        cost_estimate=pl.CostEstimate(
            flops=flops, transcendentals=0, bytes_accessed=bytes_accessed),
    )(x, sigma, w1, b1, w2c, b2, w3c, b3p)

    return out[:B, :out_dim]


def init_params(key, input_dim, hidden=256):
    """Deterministic init mimicking nn.Linear default (U[-1/sqrt(fan_in), +])."""
    def linear(k, fan_in, fan_out):
        kw, kb = jax.random.split(k)
        bound = 1.0 / jnp.sqrt(float(fan_in))
        w = jax.random.uniform(kw, (fan_in, fan_out), jnp.float32, -bound, bound)
        b = jax.random.uniform(kb, (1, fan_out), jnp.float32, -bound, bound)
        return w, b

    k1, k2, k3 = jax.random.split(key, 3)
    w1, b1 = linear(k1, input_dim + 1, hidden)
    w2, b2 = linear(k2, hidden, hidden)
    w3, b3 = linear(k3, hidden, input_dim)
    return (w1, b1, w2, b2, w3, b3)


def scorenet_reference(x, sigma, params):
    w1, b1, w2, b2, w3, b3 = params
    h = jnp.concatenate([x, sigma], axis=1)
    h = jax.nn.relu(h @ w1 + b1)
    h = jax.nn.relu(h @ w2 + b2)
    return h @ w3 + b3


if __name__ == "__main__":
    key = jax.random.PRNGKey(0)
    kx, ks, kp = jax.random.split(key, 3)

    input_dim = 2                            # swissroll -> 2-D points
    params = init_params(kp, input_dim)

    # (a) Exactness check at the original tiny problem size, f32 MXU path.
    B_small = 8
    x_s = jax.random.normal(kx, (B_small, input_dim), jnp.float32)
    sig_s = jax.random.uniform(ks, (B_small, 1), jnp.float32, 0.1, 1.0)
    out_s = jax.block_until_ready(
        scorenet_forward(x_s, sig_s, params, use_bf16=False))
    ref_s = scorenet_reference(x_s, sig_s, params)
    assert out_s.shape == (B_small, input_dim)
    assert jnp.allclose(out_s, ref_s, atol=1e-5, rtol=1e-5)

    # (b) Performance-shaped call: larger M, tiled M grid (2 tiles of 256),
    #     bf16 MXU inputs with f32 accumulation.
    B = 512
    x = jax.random.normal(kx, (B, input_dim), jnp.float32)
    sig = jax.random.uniform(ks, (B, 1), jnp.float32, 0.1, 1.0)
    out = jax.block_until_ready(
        scorenet_forward(x, sig, params, tm=256, use_bf16=True))
    ref = scorenet_reference(x, sig, params)
    assert out.shape == (B, input_dim)
    assert jnp.allclose(out, ref, atol=3e-2, rtol=3e-2)   # bf16 matmul tolerance

    print("KERNEL_OK")
</pallas_src>

<mosaic_0001>
module attributes {stable_mosaic.version = 11 : i64} {
  func.func @_scorenet_kernel(%arg0: i32, %arg1: memref<8x2xf32, #tpu.memory_space<vmem>>, %arg2: memref<8x1xf32, #tpu.memory_space<vmem>>, %arg3: memref<3x256xf32, #tpu.memory_space<vmem>>, %arg4: memref<1x256xf32, #tpu.memory_space<vmem>>, %arg5: memref<256x256xf32, #tpu.memory_space<vmem>>, %arg6: memref<1x256xf32, #tpu.memory_space<vmem>>, %arg7: memref<256x128xf32, #tpu.memory_space<vmem>>, %arg8: memref<1x128xf32, #tpu.memory_space<vmem>>, %arg9: memref<8x128xf32, #tpu.memory_space<vmem>>) attributes {dimension_semantics = [#tpu.dimension_semantics<parallel>], iteration_bounds = array<i64: 1>, scalar_prefetch = 0 : i64, scratch_operands = 0 : i64, tpu.core_type = #tpu.core_type<tc>, window_params = [{transform_indices = @transform_0, window_bounds = array<i64: 8, 2>}, {transform_indices = @transform_1, window_bounds = array<i64: 8, 1>}, {pipeline_mode = #tpu.pipeline_mode<synchronous>, transform_indices = @transform_2, window_bounds = array<i64: 3, 256>}, {pipeline_mode = #tpu.pipeline_mode<synchronous>, transform_indices = @transform_3, window_bounds = array<i64: 1, 256>}, {pipeline_mode = #tpu.pipeline_mode<synchronous>, transform_indices = @transform_4, window_bounds = array<i64: 256, 256>}, {pipeline_mode = #tpu.pipeline_mode<synchronous>, transform_indices = @transform_5, window_bounds = array<i64: 1, 256>}, {pipeline_mode = #tpu.pipeline_mode<synchronous>, transform_indices = @transform_6, window_bounds = array<i64: 256, 128>}, {pipeline_mode = #tpu.pipeline_mode<synchronous>, transform_indices = @transform_7, window_bounds = array<i64: 1, 128>}, {transform_indices = @transform_8, window_bounds = array<i64: 8, 128>}]} {
    %c0 = arith.constant 0 : index
    %c0_0 = arith.constant 0 : index
    %0 = vector.load %arg2[%c0, %c0_0] : memref<8x1xf32, #tpu.memory_space<vmem>>, vector<8x1xf32>
    %c2 = arith.constant 2 : index
    %c0_1 = arith.constant 0 : index
    %1 = vector.load %arg3[%c2, %c0_1] : memref<3x256xf32, #tpu.memory_space<vmem>>, vector<1x256xf32>
    %2 = vector.broadcast %0 : vector<8x1xf32> to vector<8x256xf32>
    %3 = vector.broadcast %1 : vector<1x256xf32> to vector<8x256xf32>
    %4 = arith.mulf %2, %3 : vector<8x256xf32>
    %c0_2 = arith.constant 0 : index
    %c0_3 = arith.constant 0 : index
    %5 = vector.load %arg4[%c0_2, %c0_3] : memref<1x256xf32, #tpu.memory_space<vmem>>, vector<1x256xf32>
    %6 = vector.broadcast %5 : vector<1x256xf32> to vector<8x256xf32>
    %7 = arith.addf %4, %6 : vector<8x256xf32>
    %c0_4 = arith.constant 0 : index
    %c0_5 = arith.constant 0 : index
    %8 = vector.load %arg1[%c0_4, %c0_5] : memref<8x2xf32, #tpu.memory_space<vmem>>, vector<8x2xf32>
    %9 = vector.extract_strided_slice %8 {offsets = [0, 0], sizes = [8, 1], strides = [1, 1]} : vector<8x2xf32> to vector<8x1xf32>
    %c0_6 = arith.constant 0 : index
    %c0_7 = arith.constant 0 : index
    %10 = vector.load %arg3[%c0_6, %c0_7] : memref<3x256xf32, #tpu.memory_space<vmem>>, vector<1x256xf32>
    %11 = vector.broadcast %9 : vector<8x1xf32> to vector<8x256xf32>
    %12 = vector.broadcast %10 : vector<1x256xf32> to vector<8x256xf32>
    %13 = arith.mulf %11, %12 : vector<8x256xf32>
    %14 = arith.addf %7, %13 : vector<8x256xf32>
    %15 = vector.extract_strided_slice %8 {offsets = [0, 1], sizes = [8, 1], strides = [1, 1]} : vector<8x2xf32> to vector<8x1xf32>
    %c1 = arith.constant 1 : index
    %c0_8 = arith.constant 0 : index
    %16 = vector.load %arg3[%c1, %c0_8] : memref<3x256xf32, #tpu.memory_space<vmem>>, vector<1x256xf32>
    %17 = vector.broadcast %15 : vector<8x1xf32> to vector<8x256xf32>
    %18 = vector.broadcast %16 : vector<1x256xf32> to vector<8x256xf32>
    %19 = arith.mulf %17, %18 : vector<8x256xf32>
    %20 = arith.addf %14, %19 : vector<8x256xf32>
    %cst = arith.constant 0.000000e+00 : f32
    %21 = vector.broadcast %cst : f32 to vector<8x256xf32>
    %22 = arith.maximumf %20, %21 : vector<8x256xf32>
    %c0_9 = arith.constant 0 : index
    %c0_10 = arith.constant 0 : index
    %23 = vector.load %arg5[%c0_9, %c0_10] : memref<256x256xf32, #tpu.memory_space<vmem>>, vector<256x256xf32>
    %cst_11 = arith.constant dense<0.000000e+00> : vector<8x256xf32>
    %24 = tpu.matmul %22, %23, %cst_11 {dimension_numbers = #tpu.dot_dimension_numbers<[1], [0], [0], [1], [0, 0, 1, 1], [], []>} : vector<8x256xf32>, vector<256x256xf32>, vector<8x256xf32> -> vector<8x256xf32>
    %c0_12 = arith.constant 0 : index
    %c0_13 = arith.constant 0 : index
    %25 = vector.load %arg6[%c0_12, %c0_13] : memref<1x256xf32, #tpu.memory_space<vmem>>, vector<1x256xf32>
    %26 = vector.broadcast %25 : vector<1x256xf32> to vector<8x256xf32>
    %27 = arith.addf %24, %26 : vector<8x256xf32>
    %cst_14 = arith.constant 0.000000e+00 : f32
    %28 = vector.broadcast %cst_14 : f32 to vector<8x256xf32>
    %29 = arith.maximumf %27, %28 : vector<8x256xf32>
    %c0_15 = arith.constant 0 : index
    %c0_16 = arith.constant 0 : index
    %30 = vector.load %arg7[%c0_15, %c0_16] : memref<256x128xf32, #tpu.memory_space<vmem>>, vector<256x128xf32>
    %cst_17 = arith.constant dense<0.000000e+00> : vector<8x128xf32>
    %31 = tpu.matmul %29, %30, %cst_17 {dimension_numbers = #tpu.dot_dimension_numbers<[1], [0], [0], [1], [0, 0, 1, 1], [], []>} : vector<8x256xf32>, vector<256x128xf32>, vector<8x128xf32> -> vector<8x128xf32>
    %c0_18 = arith.constant 0 : index
    %c0_19 = arith.constant 0 : index
    %32 = vector.load %arg8[%c0_18, %c0_19] : memref<1x128xf32, #tpu.memory_space<vmem>>, vector<1x128xf32>
    %33 = vector.broadcast %32 : vector<1x128xf32> to vector<8x128xf32>
    %34 = arith.addf %31, %33 : vector<8x128xf32>
    %c0_20 = arith.constant 0 : index
    %c0_21 = arith.constant 0 : index
    %35 = vector.load %arg9[%c0_20, %c0_21] : memref<8x128xf32, #tpu.memory_space<vmem>>, vector<8x128xf32>
    tpu.vector_store %arg9[%c0_20, %c0_21], %34 {strides = array<i32>} : memref<8x128xf32, #tpu.memory_space<vmem>>, vector<8x128xf32>,
    return
  }
  func.func @transform_0(%arg0: i32) -> (i32, i32) {
    %c0_i32 = arith.constant 0 : i32
    %c0_i32_0 = arith.constant 0 : i32
    return %arg0, %c0_i32 : i32, i32
  }
  func.func @transform_1(%arg0: i32) -> (i32, i32) {
    %c0_i32 = arith.constant 0 : i32
    %c0_i32_0 = arith.constant 0 : i32
    return %arg0, %c0_i32 : i32, i32
  }
  func.func @transform_2(%arg0: i32) -> (i32, i32) {
    %c0_i32 = arith.constant 0 : i32
    %c0_i32_0 = arith.constant 0 : i32
    %c0_i32_1 = arith.constant 0 : i32
    return %c0_i32, %c0_i32_0 : i32, i32
  }
  func.func @transform_3(%arg0: i32) -> (i32, i32) {
    %c0_i32 = arith.constant 0 : i32
    %c0_i32_0 = arith.constant 0 : i32
    %c0_i32_1 = arith.constant 0 : i32
    return %c0_i32, %c0_i32_0 : i32, i32
  }
  func.func @transform_4(%arg0: i32) -> (i32, i32) {
    %c0_i32 = arith.constant 0 : i32
    %c0_i32_0 = arith.constant 0 : i32
    %c0_i32_1 = arith.constant 0 : i32
    return %c0_i32, %c0_i32_0 : i32, i32
  }
  func.func @transform_5(%arg0: i32) -> (i32, i32) {
    %c0_i32 = arith.constant 0 : i32
    %c0_i32_0 = arith.constant 0 : i32
    %c0_i32_1 = arith.constant 0 : i32
    return %c0_i32, %c0_i32_0 : i32, i32
  }
  func.func @transform_6(%arg0: i32) -> (i32, i32) {
    %c0_i32 = arith.constant 0 : i32
    %c0_i32_0 = arith.constant 0 : i32
    %c0_i32_1 = arith.constant 0 : i32
    return %c0_i32, %c0_i32_0 : i32, i32
  }
  func.func @transform_7(%arg0: i32) -> (i32, i32) {
    %c0_i32 = arith.constant 0 : i32
    %c0_i32_0 = arith.constant 0 : i32
    %c0_i32_1 = arith.constant 0 : i32
    return %c0_i32, %c0_i32_0 : i32, i32
  }
  func.func @transform_8(%arg0: i32) -> (i32, i32) {
    %c0_i32 = arith.constant 0 : i32
    %c0_i32_0 = arith.constant 0 : i32
    return %arg0, %c0_i32 : i32, i32
  }
}

</mosaic_0001>

<bundles_post_ra>
// kernel: tpu_custom_call.1
= control target key start
LH: loop header
LB: loop body
LE: loop exit
PB: predicated region body
PF: predicated region fallthrough
CT: control target
= control target key end

     0   :  { %13 = vsyncpa [#allocation3], 0  ;;  %s745_s0 = inlined_call_operand.vmem [shape: f32[8,2], index: 0, kind: input, shape index: {}]   ;;  %s746_s1 = inlined_call_operand.vmem [shape: f32[8,1], index: 1, kind: input, shape index: {}]   ;;  %s747_s2 = inlined_call_operand.vmem [shape: f32[3,256], index: 2, kind: input, shape index: {}]   ;;  %s748_s3 = inlined_call_operand.vmem [shape: f32[1,256], index: 3, kind: input, shape index: {}]   ;;  %s749_s4 = inlined_call_operand.hbm [shape: f32[256,256], index: 4, kind: input, shape index: {}]   ;;  %s750_s5 = inlined_call_operand.vmem [shape: f32[1,256], index: 5, kind: input, shape index: {}]   ;;  %s751_s6 = inlined_call_operand.hbm [shape: f32[256,128], index: 6, kind: input, shape index: {}]   ;;  %s752_s7 = inlined_call_operand.vmem [shape: f32[1,128], index: 7, kind: input, shape index: {}]   ;;  %s753_s8 = inlined_call_operand.hbm [shape: f32[8,128], index: 8, kind: output, shape index: {}]  }
   0x1   :  { %14 = vsyncpa [#allocation6], 0 }
   0x2   :  { %15 = vsyncpa [#allocation4], 0  ;;  %s631_s27 = smov [#allocation2]   ;;  %s559_s9 = scalar_lea.hbm %s749_s4, 8192 }
   0x3   :  { %s29_s28 = sshll.u32 %s631_s27, 4  ;;  %p560_p0 = scmp.ne.s32.totalorder %s749_s4, %s559_s9  ;;  %s30_s28 = int_to_ptr.vmem [resolvable:$true] %s29_s28 }
   0x4   :  { %p563_p1 = scmp.lt.u32.totalorder %s559_s9, %s749_s4 }
   0x6   :  { %p565_p2 = pnand %p563_p1, %p560_p0 }
   0x8   :  { %568 = shalt.err (!%p565_p2)
}
   0x9   :  { %s569_s14 = scalar_lea.vmem %s30_s28, 8192  ;;  %p574_p4 = scmp.lt.s32.totalorder %s30_s28, %s30_s28 }
   0xa   :  { %p570_p3 = scmp.ne.s32.totalorder %s30_s28, %s569_s14  ;;  %p575_p5 = scmp.lt.s32.totalorder %s569_s14, %s569_s14 }
   0xc   :  { %p576_p6 = por %p575_p5, %p574_p4 }
   0xe   :  { %p577_p7 = pnand %p576_p6, %p570_p3 }
  0x10   :  { %580 = shalt.err (!%p577_p7)
}
  0x11   :  { %s632_s15 = smov 256   ;;  %s633_s16 = smov 16  }
  0x12   :  { %35 = dma.hbm_to_vmem [thread:$0]  %s749_s4, 8192, %s30_s28, [#allocation3], %s632_s15, %s632_s15, %s633_s16  }
  0x13   :  { %s634_s19 = smov [#allocation5]   ;;  %s581_s23 = scalar_lea.hbm %s751_s6, 4096 }
  0x14   :  { %s43_s20 = sshll.u32 %s634_s19, 4  ;;  %p582_p8 = scmp.ne.s32.totalorder %s751_s6, %s581_s23  ;;  %s44_s20 = int_to_ptr.vmem [resolvable:$true] %s43_s20 }
  0x15   :  { %p585_p9 = scmp.lt.u32.totalorder %s581_s23, %s751_s6 }
  0x17   :  { %p587_p10 = pnand %p585_p9, %p582_p8 }
  0x19   :  { %590 = shalt.err (!%p587_p10)
}
  0x1a   :  { %s591_s29 = scalar_lea.vmem %s44_s20, 4096  ;;  %p596_p12 = scmp.lt.s32.totalorder %s44_s20, %s44_s20 }
  0x1b   :  { %p592_p11 = scmp.ne.s32.totalorder %s44_s20, %s591_s29  ;;  %p597_p13 = scmp.lt.s32.totalorder %s591_s29, %s591_s29 }
  0x1d   :  { %p598_p0 = por %p597_p13, %p596_p12 }
  0x1f   :  { %p599_p1 = pnand %p598_p0, %p592_p11 }
  0x21   :  { %602 = shalt.err (!%p599_p1)
}
  0x22   :  { %s635_s4 = smov 128   ;;  %s636_s28 = smov 8  }
  0x23   :  { %49 = dma.hbm_to_vmem [thread:$0]  %s751_s6, 4096, %s44_s20, [#allocation6], %s635_s4, %s635_s4, %s636_s28  }
  0x24   :  { %625 = dma.done.wait [#allocation3], 8192  }
  0x25   :  { %626 = vsyncadd [#allocation3], 4294959104 }
  0x26   :  { %627 = dma.done.wait [#allocation6], 4096  }
  0x27   :  { %628 = vsyncadd [#allocation6], 4294963200  ;;  %v637_v0 = vmov 0   ;;  %v638_v1 = vmov 1   ;;  %v58_v2 = vld [vmem:[%s746_s1] sm:$0xff]  ;;  %v139_v4 = vld [vmem:[#allocation2 + $0x8] sm:$0xff] }
  0x28   :  { %556 = vset.pattern.permute.xlu0 %v637_v0  ;;  %557 = vset.pattern.permute.xlu1 %v638_v1  ;;  %v93_v3 = vld [vmem:[%s745_s0] sm:$0xff]  ;;  %v141_v5 = vld [vmem:[#allocation2 + $0x18] sm:$0xff]  ;;  %v140_v7 = vld [vmem:[#allocation2 + $0x10] sm:$0xff]  ;;  %s639_s21 = smov [#allocation7]  }
  0x29   :  { %63 = vperm.xlu0 %556, %v58_v2   ;;  %118 = vperm.xlu1 %557, %v93_v3   ;;  %v138_v6 = vld [vmem:[#allocation2] sm:$0xff]  ;;  %v451_v8 = vpack.c.bf16 %v141_v5, %v139_v4  ;;  %v143_v10 = vld [vmem:[#allocation2 + $0x28] sm:$0xff]  ;;  %v145_v11 = vld [vmem:[#allocation2 + $0x38] sm:$0xff]  ;;  %s403_s22 = sshll.u32 %s639_s21, 4  ;;  %s404_s22 = int_to_ptr.vmem [resolvable:$true] %s403_s22 }
  0x2a   :  { %v453_v9 = vpack.c.bf16 %v140_v7, %v138_v6  ;;  %v142_v12 = vld [vmem:[#allocation2 + $0x20] sm:$0xff]  ;;  %v455_v13 = vpack.c.bf16 %v145_v11, %v143_v10  ;;  %v144_v14 = vld [vmem:[#allocation2 + $0x30] sm:$0xff]  ;;  %v147_v15 = vld [vmem:[#allocation2 + $0x48] sm:$0xff]  ;;  %p608_p3 = scmp.lt.s32.totalorder %s404_s22, %s404_s22 }
  0x2b   :  { %v149_v16 = vld [vmem:[#allocation2 + $0x58] sm:$0xff]  ;;  %452 = vmatprep.subr.bf16.mxu0 %v451_v8  ;;  %v457_v17 = vpack.c.bf16 %v144_v14, %v142_v12  ;;  %v146_v19 = vld [vmem:[#allocation2 + $0x40] sm:$0xff]  ;;  %v148_v20 = vld [vmem:[#allocation2 + $0x50] sm:$0xff] }
  0x2c   :  { %454 = vmatpush1.bf16.msra.mxu0 %v453_v9  ;;  %v459_v18 = vpack.c.bf16 %v149_v16, %v147_v15  ;;  %v151_v21 = vld [vmem:[#allocation2 + $0x68] sm:$0xff]  ;;  %v153_v22 = vld [vmem:[#allocation2 + $0x78] sm:$0xff]  ;;  %v461_v23 = vpack.c.bf16 %v148_v20, %v146_v19  ;;  %v150_v25 = vld [vmem:[#allocation2 + $0x60] sm:$0xff] }
  0x2d   :  { %97 = vperm.xlu0 %556, %v93_v3   ;;  %456 = vmatprep.subr.bf16.mxu0 %v455_v13  ;;  %v463_v24 = vpack.c.bf16 %v153_v22, %v151_v21  ;;  %v152_v26 = vld [vmem:[#allocation2 + $0x70] sm:$0xff]  ;;  %v155_v27 = vld [vmem:[#allocation2 + $0x88] sm:$0xff]  ;;  %v157_v28 = vld [vmem:[#allocation2 + $0x98] sm:$0xff] }
  0x2e   :  { %v465_v29 = vpack.c.bf16 %v152_v26, %v150_v25  ;;  %v467_v30 = vpack.c.bf16 %v157_v28, %v155_v27  ;;  %v154_v31 = vld [vmem:[#allocation2 + $0x80] sm:$0xff]  ;;  %v156_v32 = vld [vmem:[#allocation2 + $0x90] sm:$0xff]  ;;  %v159_v33 = vld [vmem:[#allocation2 + $0xa8] sm:$0xff] }
  0x2f   :  { %v161_v34 = vld [vmem:[#allocation2 + $0xb8] sm:$0xff]  ;;  %v469_v35 = vpack.c.bf16 %v156_v32, %v154_v31  ;;  %v158_v37 = vld [vmem:[#allocation2 + $0xa0] sm:$0xff]  ;;  %v160_v38 = vld [vmem:[#allocation2 + $0xb0] sm:$0xff] }
  0x30   :  { %458 = vmatpush1.bf16.msra.mxu0 %v457_v17  ;;  %v471_v36 = vpack.c.bf16 %v161_v34, %v159_v33  ;;  %v163_v39 = vld [vmem:[#allocation2 + $0xc8] sm:$0xff]  ;;  %v165_v40 = vld [vmem:[#allocation2 + $0xd8] sm:$0xff]  ;;  %v473_v41 = vpack.c.bf16 %v160_v38, %v158_v37  ;;  %v162_v43 = vld [vmem:[#allocation2 + $0xc0] sm:$0xff] }
  0x31   :  { %558 = vset.pattern.permute.xlu0 %v638_v1  ;;  %460 = vmatprep.subr.bf16.mxu0 %v459_v18  ;;  %v475_v42 = vpack.c.bf16 %v165_v40, %v163_v39  ;;  %v164_v44 = vld [vmem:[#allocation2 + $0xd0] sm:$0xff]  ;;  %v167_v45 = vld [vmem:[#allocation2 + $0xe8] sm:$0xff]  ;;  %v169_v46 = vld [vmem:[#allocation2 + $0xf8] sm:$0xff] }
  0x32   :  { %v303_v47 = vld [vmem:[#allocation5 + $0x80] sm:$0xff]  ;;  %v304_v48 = vld [vmem:[#allocation5 + $0x88] sm:$0xff]  ;;  %v305_v53 = vld [vmem:[#allocation5 + $0x90] sm:$0xff]  ;;  %v477_v54 = vpack.c.bf16 %v164_v44, %v162_v43  ;;  %v479_v59 = vpack.c.bf16 %v169_v46, %v167_v45 }
  0x33   :  { %v166_v49 = vld [vmem:[#allocation2 + $0xe0] sm:$0xff]  ;;  %v515_v50 = vpack.c.bf16 %v304_v48, %v303_v47  ;;  %v288_v52 = vld [vmem:[#allocation5 + $0x8] sm:$0xff]  ;;  %v306_v56 = vld [vmem:[#allocation5 + $0x98] sm:$0xff] }
  0x34   :  { %462 = vmatpush1.bf16.msra.mxu0 %v461_v23  ;;  %v287_v51 = vld [vmem:[#allocation5] sm:$0xff]  ;;  %v289_v57 = vld [vmem:[#allocation5 + $0x10] sm:$0xff]  ;;  %v290_v58 = vld [vmem:[#allocation5 + $0x18] sm:$0xff]  ;;  %v519_v61 = vpack.c.bf16 %v306_v56, %v305_v53 }
  0x35   :  { %464 = vmatprep.subr.bf16.mxu0 %v463_v24  ;;  %v517_v55 = vpack.c.bf16 %v288_v52, %v287_v51  ;;  %v168_v60 = vld [vmem:[#allocation2 + $0xf0] sm:$0xff]  ;;  %516 = vmatprep.subr.bf16.mxu1 %v515_v50  ;;  %v307_v62 = vld [vmem:[#allocation5 + $0xa0] sm:$0xff]  ;;  %v308_v63 = vld [vmem:[#allocation5 + $0xa8] sm:$0xff]  ;;  %v521_v2 = vpack.c.bf16 %v290_v58, %v289_v57 }
  0x36   :  { %v171_v0 = vld [vmem:[#allocation2 + $0x108] sm:$0xff]  ;;  %v173_v1 = vld [vmem:[#allocation2 + $0x118] sm:$0xff]  ;;  %v523_v3 = vpack.c.bf16 %v308_v63, %v307_v62  ;;  %v291_v4 = vld [vmem:[#allocation5 + $0x20] sm:$0xff]  ;;  %v481_v6 = vpack.c.bf16 %v168_v60, %v166_v49 }
  0x37   :  { %518 = vmatpush3.bf16.msra.mxu1 %v517_v55  ;;  %v292_v5 = vld [vmem:[#allocation5 + $0x28] sm:$0xff]  ;;  %v309_v7 = vld [vmem:[#allocation5 + $0xb0] sm:$0xff]  ;;  %v310_v8 = vld [vmem:[#allocation5 + $0xb8] sm:$0xff]  ;;  %v483_v9 = vpack.c.bf16 %v173_v1, %v171_v0 }
  0x38   :  { %466 = vmatpush1.bf16.msra.mxu0 %v465_v29  ;;  %520 = vmatprep.subr.bf16.mxu1 %v519_v61  ;;  %v170_v10 = vld [vmem:[#allocation2 + $0x100] sm:$0xff]  ;;  %v172_v11 = vld [vmem:[#allocation2 + $0x110] sm:$0xff]  ;;  %v175_v12 = vld [vmem:[#allocation2 + $0x128] sm:$0xff]  ;;  %v525_v14 = vpack.c.bf16 %v292_v5, %v291_v4  ;;  %v527_v15 = vpack.c.bf16 %v310_v8, %v309_v7 }
  0x39   :  { %468 = vmatprep.subr.bf16.mxu0 %v467_v30  ;;  %v177_v13 = vld [vmem:[#allocation2 + $0x138] sm:$0xff]  ;;  %v293_v16 = vld [vmem:[#allocation5 + $0x30] sm:$0xff]  ;;  %v485_v18 = vpack.c.bf16 %v172_v11, %v170_v10  ;;  %v311_v19 = vld [vmem:[#allocation5 + $0xc0] sm:$0xff]  ;;  %v67_v11 = vlaneseq }
  0x3a   :  { %v294_v17 = vld [vmem:[#allocation5 + $0x38] sm:$0xff]  ;;  %v312_v20 = vld [vmem:[#allocation5 + $0xc8] sm:$0xff]  ;;  %v487_v21 = vpack.c.bf16 %v177_v13, %v175_v12  ;;  %v174_v22 = vld [vmem:[#allocation2 + $0x120] sm:$0xff] }
  0x3b   :  { %522 = vmatpush3.bf16.msra.mxu1 %v521_v2  ;;  %v176_v23 = vld [vmem:[#allocation2 + $0x130] sm:$0xff]  ;;  %v179_v24 = vld [vmem:[#allocation2 + $0x148] sm:$0xff]  ;;  %v181_v25 = vld [vmem:[#allocation2 + $0x158] sm:$0xff]  ;;  %v529_v26 = vpack.c.bf16 %v294_v17, %v293_v16  ;;  %v531_v27 = vpack.c.bf16 %v312_v20, %v311_v19  ;;  %v68_v12 = vshrl.u32 %v67_v11, 7 }
  0x3c   :  { %470 = vmatpush1.bf16.msra.mxu0 %v469_v35  ;;  %524 = vmatprep.subr.bf16.mxu1 %v523_v3  ;;  %v295_v28 = vld [vmem:[#allocation5 + $0x40] sm:$0xff]  ;;  %v296_v29 = vld [vmem:[#allocation5 + $0x48] sm:$0xff]  ;;  %v489_v30 = vpack.c.bf16 %v176_v23, %v174_v22  ;;  %v313_v31 = vld [vmem:[#allocation5 + $0xd0] sm:$0xff]  ;;  %v491_v33 = vpack.c.bf16 %v181_v25, %v179_v24 }
  0x3d   :  { %472 = vmatprep.subr.bf16.mxu0 %v471_v36  ;;  %v314_v32 = vld [vmem:[#allocation5 + $0xd8] sm:$0xff]  ;;  %v178_v34 = vld [vmem:[#allocation2 + $0x140] sm:$0xff]  ;;  %v180_v35 = vld [vmem:[#allocation2 + $0x150] sm:$0xff]  ;;  %v533_v38 = vpack.c.bf16 %v296_v29, %v295_v28  ;;  %v69_v13 = vsub.s32 0, %v68_v12 }
  0x3e   :  { %v183_v36 = vld [vmem:[#allocation2 + $0x168] sm:$0xff]  ;;  %v185_v37 = vld [vmem:[#allocation2 + $0x178] sm:$0xff]  ;;  %v535_v39 = vpack.c.bf16 %v314_v32, %v313_v31  ;;  %v297_v40 = vld [vmem:[#allocation5 + $0x50] sm:$0xff] }
  0x3f   :  { %526 = vmatpush3.bf16.msra.mxu1 %v525_v14  ;;  %v315_v43 = vld [vmem:[#allocation5 + $0xe0] sm:$0xff]  ;;  %v316_v44 = vld [vmem:[#allocation5 + $0xe8] sm:$0xff]  ;;  %v495_v45 = vpack.c.bf16 %v185_v37, %v183_v36  ;;  %v184_v47 = vld [vmem:[#allocation2 + $0x170] sm:$0xff]  ;;  %v73_v14 = vsub.s32 1, %v68_v12 }
  0x40   :  { %474 = vmatpush1.bf16.msra.mxu0 %v473_v41  ;;  %528 = vmatprep.subr.bf16.mxu1 %v527_v15  ;;  %v298_v41 = vld [vmem:[#allocation5 + $0x58] sm:$0xff]  ;;  %v182_v46 = vld [vmem:[#allocation2 + $0x160] sm:$0xff]  ;;  %v187_v48 = vld [vmem:[#allocation2 + $0x188] sm:$0xff]  ;;  %v539_v51 = vpack.c.bf16 %v316_v44, %v315_v43 }
  0x41   :  { %476 = vmatprep.subr.bf16.mxu0 %v475_v42  ;;  %v493_v42 = vpack.c.bf16 %v180_v35, %v178_v34  ;;  %v189_v49 = vld [vmem:[#allocation2 + $0x198] sm:$0xff]  ;;  %v537_v50 = vpack.c.bf16 %v298_v41, %v297_v40  ;;  %v497_v52 = vpack.c.bf16 %v184_v47, %v182_v46  ;;  %v188_v55 = vld [vmem:[#allocation2 + $0x190] sm:$0xff]  ;;  %v191_v56 = vld [vmem:[#allocation2 + $0x1a8] sm:$0xff] }
  0x42   :  { %v499_v53 = vpack.c.bf16 %v189_v49, %v187_v48  ;;  %v193_v57 = vld [vmem:[#allocation2 + $0x1b8] sm:$0xff]  ;;  %v190_v60 = vld [vmem:[#allocation2 + $0x1a0] sm:$0xff]  ;;  %v192_v61 = vld [vmem:[#allocation2 + $0x1b0] sm:$0xff] }
  0x43   :  { %530 = vmatpush3.bf16.msra.mxu1 %v529_v26  ;;  %v195_v62 = vld [vmem:[#allocation2 + $0x1c8] sm:$0xff]  ;;  %v197_v63 = vld [vmem:[#allocation2 + $0x1d8] sm:$0xff]  ;;  %v505_v0 = vpack.c.bf16 %v192_v61, %v190_v60  ;;  %v194_v2 = vld [vmem:[#allocation2 + $0x1c0] sm:$0xff] }
  0x44   :  { %478 = vmatpush1.bf16.msra.mxu0 %v477_v54  ;;  %532 = vmatprep.subr.bf16.mxu1 %v531_v27  ;;  %v186_v54 = vld [vmem:[#allocation2 + $0x180] sm:$0xff]  ;;  %v507_v1 = vpack.c.bf16 %v197_v63, %v195_v62  ;;  %v196_v3 = vld [vmem:[#allocation2 + $0x1d0] sm:$0xff]  ;;  %v199_v4 = vld [vmem:[#allocation2 + $0x1e8] sm:$0xff] }
  0x45   :  { %480 = vmatprep.subr.bf16.mxu0 %v479_v59  ;;  %v501_v58 = vpack.c.bf16 %v188_v55, %v186_v54  ;;  %v503_v59 = vpack.c.bf16 %v193_v57, %v191_v56  ;;  %v201_v5 = vld [vmem:[#allocation2 + $0x1f8] sm:$0xff]  ;;  %v198_v8 = vld [vmem:[#allocation2 + $0x1e0] sm:$0xff]  ;;  %v317_v47 = vld [vmem:[#allocation5 + $0xf0] sm:$0xff] }
  0x46   :  { %v511_v7 = vpack.c.bf16 %v201_v5, %v199_v4  ;;  %v413_v15 = vld [vmem:[%s747_s2 + $0x2] ss:$4 sm:$0x3]  ;;  %v414_v19 = vld [vmem:[%s747_s2 + $0x1] ss:$4 sm:$0x3] }
  0x47   :  { %534 = vmatpush3.bf16.msra.mxu1 %v533_v38  ;;  %v70_v16 = vrot.slane %v413_v15, %v69_v13  ;;  %v74_v17 = vrot.slane %v413_v15, %v73_v14  ;;  %v94_v20 = vld [vmem:[%s747_s2] ss:$4 sm:$0x3]  ;;  %v125_v24 = vrot.slane %v414_v19, %v69_v13  ;;  %v129_v25 = vrot.slane %v414_v19, %v73_v14  ;;  %v318_v48 = vld [vmem:[#allocation5 + $0xf8] sm:$0xff] }
  0x48   :  { %482 = vmatpush1.bf16.msra.mxu0 %v481_v6  ;;  %536 = vmatprep.subr.bf16.mxu1 %v535_v39  ;;  %v509_v6 = vpack.c.bf16 %v196_v3, %v194_v2  ;;  %v104_v28 = vrot.slane %v94_v20, %v69_v13  ;;  %v108_v29 = vrot.slane %v94_v20, %v73_v14  ;;  %v299_v44 = vld [vmem:[#allocation5 + $0x60] sm:$0xff] }
  0x49   :  { %484 = vmatprep.subr.bf16.mxu0 %v483_v9  ;;  %v200_v9 = vld [vmem:[#allocation2 + $0x1f0] sm:$0xff]  ;;  %v543_v49 = vpack.c.bf16 %v318_v48, %v317_v47  ;;  %v415_v63 = vld [vmem:[%s752_s7] ss:$0 sm:$0xff] }
  0x4a   :  { %v513_v10 = vpack.c.bf16 %v200_v9, %v198_v8 }
  0x4b   :  { %538 = vmatpush3.bf16.msra.mxu1 %v537_v50  ;;  %v301_v50 = vld [vmem:[#allocation5 + $0x70] sm:$0xff] }
  0x4c   :  { %486 = vmatpush1.bf16.msra.mxu0 %v485_v18  ;;  %540 = vmatprep.subr.bf16.mxu1 %v539_v51  ;;  %v79_v18 = vld [vmem:[%s748_s3] sm:$0x3]  ;;  %v302_v51 = vld [vmem:[#allocation5 + $0x78] sm:$0xff] }
  0x4d   :  { %488 = vmatprep.subr.bf16.mxu0 %v487_v21  ;;  %v84_v21 = vrot.slane %v79_v18, %v69_v13  ;;  %v88_v22 = vrot.slane %v79_v18, %v73_v14 }
  0x50   :  { %490 = vmatpush1.bf16.msra.mxu0 %v489_v30 }
  0x51   :  { %492 = vmatprep.subr.bf16.mxu0 %v491_v33 }
  0x54   :  { %494 = vmatpush1.bf16.msra.mxu0 %v493_v42 }
  0x55   :  { %496 = vmatprep.subr.bf16.mxu0 %v495_v45  ;;  %v300_v45 = vld [vmem:[#allocation5 + $0x68] sm:$0xff] }
  0x56   :  { %v541_v46 = vpack.c.bf16 %v300_v45, %v299_v44 }
  0x58   :  { %498 = vmatpush1.bf16.msra.mxu0 %v497_v52  ;;  %542 = vmatpush3.bf16.msra.mxu1 %v541_v46  ;;  %v545_v52 = vpack.c.bf16 %v302_v51, %v301_v50 }
  0x59   :  { %500 = vmatprep.subr.bf16.mxu0 %v499_v53  ;;  %544 = vmatprep.subr.bf16.mxu1 %v543_v49  ;;  %v202_v53 = vld [vmem:[%s750_s5] sm:$0x3]  ;;  %s603_s5 = scalar_lea.vmem %s404_s22, 128 }
  0x5a   :  { %v207_v54 = vrot.slane %v202_v53, %v69_v13  ;;  %v211_v55 = vrot.slane %v202_v53, %v73_v14  ;;  %p604_p2 = scmp.ne.s32.totalorder %s404_s22, %s603_s5  ;;  %p609_p4 = scmp.lt.s32.totalorder %s603_s5, %s603_s5 }
  0x5c   :  { %502 = vmatpush1.bf16.msra.mxu0 %v501_v58  ;;  %546 = vmatpush3.bf16.msra.mxu1 %v545_v52  ;;  %p610_p5 = por %p609_p4, %p608_p3 }
  0x5d   :  { %504 = vmatprep.subr.bf16.mxu0 %v503_v59 }
  0x5e   :  { %p611_p6 = pnand %p610_p5, %p604_p2 }
  0x60   :  { %506 = vmatpush1.bf16.msra.mxu0 %v505_v0 }
  0x61   :  { %508 = vmatprep.subr.bf16.mxu0 %v507_v1 }
  0x64   :  { %510 = vmatpush1.bf16.msra.mxu0 %v509_v6 }
  0x65   :  { %512 = vmatprep.subr.bf16.mxu0 %v511_v7 }
  0x68   :  { %514 = vmatpush1.bf16.msra.mxu0 %v513_v10 }
  0xa8   :  { %v64_v23 = vpop.permute.xlu0 %63  ;;  %v119_v30 = vpop.permute.xlu1 %118 }
  0xa9   :  { %v77_v26 = vmul.f32 %v70_v16, %v64_v23  ;;  %v78_v27 = vmul.f32 %v74_v17, %v64_v23  ;;  %v132_v32 = vmul.f32 %v125_v24, %v119_v30  ;;  %v133_v33 = vmul.f32 %v129_v25, %v119_v30 }
  0xab   :  { %v91_v34 = vadd.f32 %v84_v21, %v77_v26  ;;  %v92_v35 = vadd.f32 %v88_v22, %v78_v27 }
  0xac   :  { %v98_v31 = vpop.permute.xlu0 %97 }
  0xad   :  { %v111_v36 = vmul.f32 %v104_v28, %v98_v31  ;;  %v112_v37 = vmul.f32 %v108_v29, %v98_v31 }
  0xaf   :  { %v113_v38 = vadd.f32 %v111_v36, %v91_v34  ;;  %v114_v39 = vadd.f32 %v112_v37, %v92_v35 }
  0xb1   :  { %v134_v40 = vadd.f32 %v132_v32, %v113_v38  ;;  %v135_v41 = vadd.f32 %v133_v33, %v114_v39 }
  0xb3   :  { %v136_v42 = vmax.f32 %v134_v40, 0.0  ;;  %v137_v43 = vmax.f32 %v135_v41, 0.0 }
  0xb5   :  { %278 = vmatprep.mubr.f32.mxu0 %v137_v43 }
  0xb6   :  { %279 = vmatmul.mubr.f32.vlgmr.msra.gmra.mrb[0].mxu0 %v136_v42 }
 0x189   :  { %v280_v56 = vpop.f32.mrb[0].mxu0 }
 0x18a   :  { %v281_v57 = vadd.f32 %v280_v56, %v207_v54  ;;  %v282_v58 = vpop.f32.mrb[1].mxu0 }
 0x18b   :  { %v283_v59 = vadd.f32 %v282_v58, %v211_v55 }
 0x18c   :  { %v285_v61 = vmax.f32 %v281_v57, 0.0 }
 0x18d   :  { %v286_v60 = vmax.f32 %v283_v59, 0.0 }
 0x18f   :  { %390 = vmatprep.mubr.f32.mxu1 %v286_v60 }
 0x190   :  { %391 = vmatmul.mubr.f32.vlgmr.msra.gmra.mrb[0].mxu1 %v285_v61 }
 0x263   :  { %v448_v62 = vpop.f32.mrb[0].mxu1 }
 0x264   :  { %v449_v0 = vpop.f32.mrb[1].mxu1 }
 0x265   :  { %v450_v1 = vadd.f32 %v449_v0, %v448_v62 }
 0x267   :  { %v393_v2 = vadd.f32 %v450_v1, %v415_v63 }
 0x269   :  { %396 = vst [vmem:[#allocation7] sm:$0xff] %v393_v2 }
 0x26a   :  { %614 = shalt.err (!%p611_p6)
}
 0x26b   :  { %s615_s25 = scalar_lea.hbm %s753_s8, 128 }
 0x26c   :  { %p616_p7 = scmp.ne.s32.totalorder %s753_s8, %s615_s25  ;;  %p619_p8 = scmp.lt.u32.totalorder %s615_s25, %s753_s8 }
 0x26e   :  { %p621_p9 = pnand %p619_p8, %p616_p7 }
 0x270   :  { %624 = shalt.err (!%p621_p9)
}
 0x271   :  { %406 = dma.vmem_to_hbm [thread:$0]  %s404_s22, 128, %s753_s8, [#allocation4]  }
 0x272   :  { %629 = dma.done.wait [#allocation4], 128  }
 0x273   :  { %630 = vsyncadd [#allocation4], 4294967168 }
 0x274   :  { %410 = vsyncpa [#allocation3], 1 }
 0x275   :  { %411 = vsyncpa [#allocation6], 1 }
 0x276   :  { %412 = vsyncpa [#allocation4], 1 }

</bundles_post_ra>
